<compile_context>
chip_gen: v6e
topology: v6e:2x2x1
jax: 0.10.0
libtpu: 0.0.40
codegen_flags: <defaults>
</compile_context>

<pallas_src>
import functools

import jax
import jax.numpy as jnp
from jax.experimental import pallas as pl
from jax.experimental.pallas import tpu as pltpu


def _attention_kernel(x_ref, wqkv_ref, bqkv_ref, wout_ref, bout_ref, o_ref,
                      *, heads, dim_head, eps, approx_recip):
    """One grid step processes `bblk` batch elements fully in VMEM.

    Wrapper-side folds: LayerNorm affine (gamma/beta) and the softmax scale
    are baked into the pre-transposed QKV weight/bias, so the kernel only
    normalizes, projects, runs heads-batched attention and the per-head
    accumulated output projection.
    """
    inner = heads * dim_head
    mm_dtype = wqkv_ref.dtype                       # matmul operand dtype
    bblk, n, d = x_ref.shape

    # ---- LayerNorm over last dim for all bblk*n tokens at once (biased
    #      variance, eps like PyTorch); affine is folded into W_qkv/b_qkv. ----
    x = x_ref[...].reshape(bblk * n, d).astype(jnp.float32)
    mean = jnp.mean(x, axis=-1, keepdims=True)
    var = jnp.mean((x - mean) ** 2, axis=-1, keepdims=True)
    xn = (x - mean) * jax.lax.rsqrt(var + eps)

    # ---- Fused (LN-affine + q-scale)-folded QKV projection:
    #      (bblk*N, D) @ (D, 3*inner) + b_qkv, then ONE cast to mm_dtype so the
    #      head-split relayouts below move 2-byte data. ----
    qkv = (jnp.dot(xn.astype(mm_dtype), wqkv_ref[...],
                   preferred_element_type=jnp.float32)
           + bqkv_ref[...]).astype(mm_dtype)        # (bblk*N, 3*inner)

    wout = wout_ref[...]                            # (heads, dim_head, D)
    bout = bout_ref[...]                            # (1, D) f32

    for b in range(bblk):                           # small static unroll
        rows = qkv[b * n:(b + 1) * n]               # (N, 3*inner)

        def split_heads(t):                         # (N, inner) -> (H, N, d)
            return jnp.transpose(t.reshape(n, heads, dim_head), (1, 0, 2))

        q = split_heads(rows[:, 0 * inner:1 * inner])
        k = split_heads(rows[:, 1 * inner:2 * inner])
        v = split_heads(rows[:, 2 * inner:3 * inner])

        # ---- Heads-batched attention (softmax scale already folded into q);
        #      normalization deferred until after the PV matmul. ----
        s = jnp.einsum('hnd,hmd->hnm', q, k,
                       preferred_element_type=jnp.float32)      # (H, N, N) f32
        mx = jnp.max(s, axis=-1, keepdims=True)
        p = jnp.exp(s - mx)                                     # unnormalized
        l = jnp.sum(p, axis=-1, keepdims=True)                  # (H, N, 1)
        o = jnp.einsum('hnm,hmd->hnd', p.astype(mm_dtype), v,
                       preferred_element_type=jnp.float32)      # (H, N, d)
        o = (o * pl.reciprocal(l, approx=approx_recip)).astype(mm_dtype)

        # ---- Output projection without the 'h n d -> n (h d)' relayout:
        #      MXU accumulates (N, d) @ (d, D) over heads into an f32 acc. ----
        acc = jnp.zeros((n, d), jnp.float32)
        for h in range(heads):
            acc = acc + jnp.dot(o[h], wout[h],
                                preferred_element_type=jnp.float32)
        o_ref[b] = (acc + bout).astype(o_ref.dtype)


def _pick_batch_block(b, n, heads):
    """Largest divisor of `b` keeping the per-step score tensors small."""
    best = 1
    for cand in range(1, b + 1):
        if b % cand:
            continue
        score_bytes = cand * heads * n * n * 4
        if score_bytes <= 8 * 1024 * 1024 and cand * n <= 4096:
            best = cand
    return best


def _vmem_limit_bytes(bblk, n, d, heads, dim_head, mm_bytes):
    """Rough-but-generous scoped-VMEM budget for this kernel instance."""
    inner = heads * dim_head
    tokens = bblk * n
    io = 2 * 2 * tokens * d * 4                                  # x + out, 2-deep
    weights = 2 * ((d * 3 * inner + inner * d) * mm_bytes + (3 * inner + d) * 4)
    qkv = tokens * 3 * inner * (4 + mm_bytes)                    # f32 + mm copy
    heads_copies = 3 * tokens * inner * mm_bytes                 # q/k/v relayouts
    scores = 2 * bblk * heads * n * n * 4                        # s and p
    attn_out = 2 * bblk * heads * n * dim_head * 4
    proj = tokens * d * 4
    est = int((io + weights + qkv + heads_copies + scores + attn_out + proj)
              * 1.5) + (4 << 20)
    return max(32 << 20, min(est, 128 << 20))


def attention_pallas(x, params, *, heads, dim_head, eps=1e-5,
                     matmul_dtype=jnp.bfloat16, approx_reciprocal=True,
                     batch_block=None):
    """Forward pass of the PyTorch Attention module via a single fused kernel.

    params (PyTorch layout):
      gamma, beta : (D,)           LayerNorm weight/bias
      wqkv        : (3*inner, D)   to_qkv.weight (no bias)
      wout        : (D, inner)     to_out[0].weight
      bout        : (D,)           to_out[0].bias
    """
    B, N, D = x.shape
    inner = heads * dim_head
    scale = dim_head ** -0.5
    mm_dtype = matmul_dtype

    gamma = params["gamma"].astype(jnp.float32)
    beta = params["beta"].astype(jnp.float32)
    wqkv = params["wqkv"].astype(jnp.float32)             # (3*inner, D)
    wout = params["wout"].astype(jnp.float32)             # (D, inner)
    bout = params["bout"].astype(jnp.float32)             # (D,)

    # One-time host-side folds: pre-transpose, fold LayerNorm affine, fold the
    # softmax scale into the Q columns, reshape W_out for per-head projection.
    wqkv_t = wqkv.T                                       # (D, 3*inner)
    wqkv_f = wqkv_t * gamma[:, None]                      # fold gamma
    bqkv_f = beta @ wqkv_t                                # fold beta -> bias
    q_scale = jnp.concatenate([jnp.full((inner,), scale, jnp.float32),
                               jnp.ones((2 * inner,), jnp.float32)])
    wqkv_f = wqkv_f * q_scale[None, :]                    # fold softmax scale
    bqkv_f = bqkv_f * q_scale
    wout_h = wout.T.reshape(heads, dim_head, D)           # (H, d, D)

    bblk = batch_block if batch_block is not None else _pick_batch_block(B, N, heads)
    assert B % bblk == 0, "batch_block must divide the batch size"
    grid = (B // bblk,)

    mm_bytes = jnp.dtype(mm_dtype).itemsize
    vmem_limit = _vmem_limit_bytes(bblk, N, D, heads, dim_head, mm_bytes)

    kernel = functools.partial(_attention_kernel, heads=heads,
                               dim_head=dim_head, eps=eps,
                               approx_recip=approx_reciprocal)

    return pl.pallas_call(
        kernel,
        out_shape=jax.ShapeDtypeStruct((B, N, D), x.dtype),
        grid_spec=pltpu.PrefetchScalarGridSpec(
            num_scalar_prefetch=0,
            grid=grid,
            in_specs=[
                pl.BlockSpec((bblk, N, D), lambda i: (i, 0, 0)),           # x
                pl.BlockSpec((D, 3 * inner), lambda i: (0, 0)),            # W_qkv'
                pl.BlockSpec((1, 3 * inner), lambda i: (0, 0)),            # b_qkv'
                pl.BlockSpec((heads, dim_head, D), lambda i: (0, 0, 0)),   # W_out
                pl.BlockSpec((1, D), lambda i: (0, 0)),                    # b_out
            ],
            out_specs=pl.BlockSpec((bblk, N, D), lambda i: (i, 0, 0)),
        ),
        compiler_params=pltpu.CompilerParams(
            dimension_semantics=("parallel",),
            vmem_limit_bytes=vmem_limit),
    )(x, wqkv_f.astype(mm_dtype), bqkv_f.reshape(1, 3 * inner),
      wout_h.astype(mm_dtype), bout.reshape(1, D))


def attention_reference(x, params, *, heads, dim_head, eps=1e-5):
    """Pure-JAX reference mirroring the PyTorch forward exactly."""
    B, N, D = x.shape
    mean = jnp.mean(x, axis=-1, keepdims=True)
    var = jnp.mean((x - mean) ** 2, axis=-1, keepdims=True)
    xn = (x - mean) / jnp.sqrt(var + eps)
    xn = xn * params["gamma"] + params["beta"]
    qkv = xn @ params["wqkv"].T
    q, k, v = jnp.split(qkv, 3, axis=-1)

    def split_heads(t):  # 'b n (h d) -> b h n d'
        return t.reshape(B, N, heads, dim_head).transpose(0, 2, 1, 3)

    q, k, v = map(split_heads, (q, k, v))
    dots = jnp.einsum("bhnd,bhmd->bhnm", q, k) * (dim_head ** -0.5)
    attn = jax.nn.softmax(dots, axis=-1)
    out = jnp.einsum("bhnm,bhmd->bhnd", attn, v)
    out = out.transpose(0, 2, 1, 3).reshape(B, N, heads * dim_head)
    return out @ params["wout"].T + params["bout"]


if __name__ == "__main__":
    # Small shapes consistent with the module: dim=32, heads=4, dim_head=8.
    B, N, D = 2, 8, 32
    heads, dim_head = 4, 8
    inner = heads * dim_head

    key = jax.random.PRNGKey(0)
    kx, k1, k2, k3, k4, k5 = jax.random.split(key, 6)

    x = jax.random.normal(kx, (B, N, D), dtype=jnp.float32)
    params = {
        "gamma": 1.0 + 0.1 * jax.random.normal(k4, (D,), jnp.float32),
        "beta": 0.05 * jax.random.normal(k5, (D,), jnp.float32),
        "wqkv": jax.random.normal(k1, (3 * inner, D), jnp.float32) * 0.05,
        "wout": jax.random.normal(k2, (D, inner), jnp.float32) * 0.05,
        "bout": jax.random.normal(k3, (D,), jnp.float32) * 0.01,
    }

    ref = attention_reference(x, params, heads=heads, dim_head=dim_head)

    # f32 matmul operands + exact reciprocal: tight check against the reference.
    out_f32 = attention_pallas(x, params, heads=heads, dim_head=dim_head,
                               matmul_dtype=jnp.float32,
                               approx_reciprocal=False)
    jax.block_until_ready(out_f32)
    assert out_f32.shape == (B, N, D)
    assert jnp.allclose(out_f32, ref, atol=1e-3, rtol=1e-3), \
        "f32 kernel mismatch vs reference"

    # Default production path: bf16 matmul operands, approx reciprocal.
    out_bf16 = attention_pallas(x, params, heads=heads, dim_head=dim_head)
    jax.block_until_ready(out_bf16)
    assert jnp.allclose(out_bf16, ref, atol=3e-2, rtol=3e-2), \
        "bf16 kernel mismatch vs reference"

    print("KERNEL_OK")
</pallas_src>

<mosaic_0001>
module attributes {stable_mosaic.version = 11 : i64} {
  func.func @_attention_kernel(%arg0: i32, %arg1: memref<2x8x32xf32, #tpu.memory_space<vmem>>, %arg2: memref<32x96xf32, #tpu.memory_space<vmem>>, %arg3: memref<1x96xf32, #tpu.memory_space<vmem>>, %arg4: memref<4x8x32xf32, #tpu.memory_space<vmem>>, %arg5: memref<1x32xf32, #tpu.memory_space<vmem>>, %arg6: memref<2x8x32xf32, #tpu.memory_space<vmem>>) attributes {dimension_semantics = [#tpu.dimension_semantics<parallel>], iteration_bounds = array<i64: 1>, scalar_prefetch = 0 : i64, scratch_operands = 0 : i64, tpu.core_type = #tpu.core_type<tc>, window_params = [{transform_indices = @transform_0, window_bounds = array<i64: 2, 8, 32>}, {pipeline_mode = #tpu.pipeline_mode<synchronous>, transform_indices = @transform_1, window_bounds = array<i64: 32, 96>}, {pipeline_mode = #tpu.pipeline_mode<synchronous>, transform_indices = @transform_2, window_bounds = array<i64: 1, 96>}, {pipeline_mode = #tpu.pipeline_mode<synchronous>, transform_indices = @transform_3, window_bounds = array<i64: 4, 8, 32>}, {pipeline_mode = #tpu.pipeline_mode<synchronous>, transform_indices = @transform_4, window_bounds = array<i64: 1, 32>}, {transform_indices = @transform_5, window_bounds = array<i64: 2, 8, 32>}]} {
    %c0 = arith.constant 0 : index
    %c0_0 = arith.constant 0 : index
    %c0_1 = arith.constant 0 : index
    %0 = vector.load %arg1[%c0, %c0_0, %c0_1] : memref<2x8x32xf32, #tpu.memory_space<vmem>>, vector<2x8x32xf32>
    %1 = vector.shape_cast %0 : vector<2x8x32xf32> to vector<16x32xf32>
    %cst = arith.constant dense<0.000000e+00> : vector<16xf32>
    %2 = vector.multi_reduction <add>, %1, %cst [1] : vector<16x32xf32> to vector<16xf32>
    %3 = vector.shape_cast %2 : vector<16xf32> to vector<16x1xf32>
    %cst_2 = arith.constant 3.200000e+01 : f32
    %4 = vector.broadcast %cst_2 : f32 to vector<16x1xf32>
    %5 = arith.divf %3, %4 : vector<16x1xf32>
    %6 = vector.broadcast %5 : vector<16x1xf32> to vector<16x32xf32>
    %7 = arith.subf %1, %6 : vector<16x32xf32>
    %8 = arith.mulf %7, %7 : vector<16x32xf32>
    %cst_3 = arith.constant dense<0.000000e+00> : vector<16xf32>
    %9 = vector.multi_reduction <add>, %8, %cst_3 [1] : vector<16x32xf32> to vector<16xf32>
    %10 = vector.shape_cast %9 : vector<16xf32> to vector<16x1xf32>
    %cst_4 = arith.constant 3.200000e+01 : f32
    %11 = vector.broadcast %cst_4 : f32 to vector<16x1xf32>
    %12 = arith.divf %10, %11 : vector<16x1xf32>
    %13 = vector.broadcast %5 : vector<16x1xf32> to vector<16x32xf32>
    %14 = arith.subf %1, %13 : vector<16x32xf32>
    %cst_5 = arith.constant 9.99999974E-6 : f32
    %15 = vector.broadcast %cst_5 : f32 to vector<16x1xf32>
    %16 = arith.addf %12, %15 : vector<16x1xf32>
    %17 = math.rsqrt %16 : vector<16x1xf32>
    %18 = vector.broadcast %17 : vector<16x1xf32> to vector<16x32xf32>
    %19 = arith.mulf %14, %18 : vector<16x32xf32>
    %c0_6 = arith.constant 0 : index
    %c0_7 = arith.constant 0 : index
    %20 = vector.load %arg2[%c0_6, %c0_7] : memref<32x96xf32, #tpu.memory_space<vmem>>, vector<32x96xf32>
    %cst_8 = arith.constant dense<0.000000e+00> : vector<16x96xf32>
    %21 = tpu.matmul %19, %20, %cst_8 {dimension_numbers = #tpu.dot_dimension_numbers<[1], [0], [0], [1], [0, 0, 1, 1], [], []>} : vector<16x32xf32>, vector<32x96xf32>, vector<16x96xf32> -> vector<16x96xf32>
    %c0_9 = arith.constant 0 : index
    %c0_10 = arith.constant 0 : index
    %22 = vector.load %arg3[%c0_9, %c0_10] : memref<1x96xf32, #tpu.memory_space<vmem>>, vector<1x96xf32>
    %23 = vector.broadcast %22 : vector<1x96xf32> to vector<16x96xf32>
    %24 = arith.addf %21, %23 : vector<16x96xf32>
    %c0_11 = arith.constant 0 : index
    %c0_12 = arith.constant 0 : index
    %c0_13 = arith.constant 0 : index
    %25 = vector.load %arg4[%c0_11, %c0_12, %c0_13] : memref<4x8x32xf32, #tpu.memory_space<vmem>>, vector<4x8x32xf32>
    %c0_14 = arith.constant 0 : index
    %c0_15 = arith.constant 0 : index
    %26 = vector.load %arg5[%c0_14, %c0_15] : memref<1x32xf32, #tpu.memory_space<vmem>>, vector<1x32xf32>
    %27 = vector.extract_strided_slice %24 {offsets = [0, 0], sizes = [8, 96], strides = [1, 1]} : vector<16x96xf32> to vector<8x96xf32>
    %28 = vector.extract_strided_slice %27 {offsets = [0, 0], sizes = [8, 32], strides = [1, 1]} : vector<8x96xf32> to vector<8x32xf32>
    %29 = vector.shape_cast %28 : vector<8x32xf32> to vector<8x4x8xf32>
    %30 = tpu.transpose %29, [1, 0, 2] : vector<8x4x8xf32> -> vector<4x8x8xf32>
    %31 = vector.extract_strided_slice %27 {offsets = [0, 32], sizes = [8, 32], strides = [1, 1]} : vector<8x96xf32> to vector<8x32xf32>
    %32 = vector.shape_cast %31 : vector<8x32xf32> to vector<8x4x8xf32>
    %33 = tpu.transpose %32, [1, 0, 2] : vector<8x4x8xf32> -> vector<4x8x8xf32>
    %34 = vector.extract_strided_slice %27 {offsets = [0, 64], sizes = [8, 32], strides = [1, 1]} : vector<8x96xf32> to vector<8x32xf32>
    %35 = vector.shape_cast %34 : vector<8x32xf32> to vector<8x4x8xf32>
    %36 = tpu.transpose %35, [1, 0, 2] : vector<8x4x8xf32> -> vector<4x8x8xf32>
    "tpu.trace_start"() <{level = 10 : i32, message = "hnd,hmd->hnm"}> : () -> ()
    %cst_16 = arith.constant dense<0.000000e+00> : vector<4x8x8xf32>
    %37 = tpu.matmul %30, %33, %cst_16 {dimension_numbers = #tpu.dot_dimension_numbers<[2], [2], [1], [1], [0, 0, 0, 1, 1, 1], [0], [0]>} : vector<4x8x8xf32>, vector<4x8x8xf32>, vector<4x8x8xf32> -> vector<4x8x8xf32>
    "tpu.trace_stop"() : () -> ()
    %cst_17 = arith.constant dense<0xFF800000> : vector<4x8xf32>
    %38 = vector.multi_reduction <maximumf>, %37, %cst_17 [2] : vector<4x8x8xf32> to vector<4x8xf32>
    %39 = vector.shape_cast %38 : vector<4x8xf32> to vector<4x8x1xf32>
    %40 = vector.broadcast %39 : vector<4x8x1xf32> to vector<4x8x8xf32>
    %41 = arith.subf %37, %40 : vector<4x8x8xf32>
    %42 = math.exp %41 : vector<4x8x8xf32>
    %cst_18 = arith.constant dense<0.000000e+00> : vector<4x8xf32>
    %43 = vector.multi_reduction <add>, %42, %cst_18 [2] : vector<4x8x8xf32> to vector<4x8xf32>
    %44 = vector.shape_cast %43 : vector<4x8xf32> to vector<4x8x1xf32>
    "tpu.trace_start"() <{level = 10 : i32, message = "hnm,hmd->hnd"}> : () -> ()
    %cst_19 = arith.constant dense<0.000000e+00> : vector<4x8x8xf32>
    %45 = tpu.matmul %42, %36, %cst_19 {dimension_numbers = #tpu.dot_dimension_numbers<[2], [1], [1], [2], [0, 0, 0, 1, 1, 2], [0], [0]>} : vector<4x8x8xf32>, vector<4x8x8xf32>, vector<4x8x8xf32> -> vector<4x8x8xf32>
    "tpu.trace_stop"() : () -> ()
    %46 = tpu.reciprocal %44 : vector<4x8x1xf32> -> vector<4x8x1xf32>
    %47 = vector.broadcast %46 : vector<4x8x1xf32> to vector<4x8x8xf32>
    %48 = arith.mulf %45, %47 : vector<4x8x8xf32>
    %cst_20 = arith.constant 0.000000e+00 : f32
    %49 = vector.broadcast %cst_20 : f32 to vector<8x32xf32>
    %50 = vector.extract_strided_slice %48 {offsets = [0, 0, 0], sizes = [1, 8, 8], strides = [1, 1, 1]} : vector<4x8x8xf32> to vector<1x8x8xf32>
    %51 = vector.shape_cast %50 : vector<1x8x8xf32> to vector<8x8xf32>
    %52 = vector.extract_strided_slice %25 {offsets = [0, 0, 0], sizes = [1, 8, 32], strides = [1, 1, 1]} : vector<4x8x32xf32> to vector<1x8x32xf32>
    %53 = vector.shape_cast %52 : vector<1x8x32xf32> to vector<8x32xf32>
    %cst_21 = arith.constant dense<0.000000e+00> : vector<8x32xf32>
    %54 = tpu.matmul %51, %53, %cst_21 {dimension_numbers = #tpu.dot_dimension_numbers<[1], [0], [0], [1], [0, 0, 1, 1], [], []>} : vector<8x8xf32>, vector<8x32xf32>, vector<8x32xf32> -> vector<8x32xf32>
    %55 = arith.addf %49, %54 : vector<8x32xf32>
    %56 = vector.extract_strided_slice %48 {offsets = [1, 0, 0], sizes = [1, 8, 8], strides = [1, 1, 1]} : vector<4x8x8xf32> to vector<1x8x8xf32>
    %57 = vector.shape_cast %56 : vector<1x8x8xf32> to vector<8x8xf32>
    %58 = vector.extract_strided_slice %25 {offsets = [1, 0, 0], sizes = [1, 8, 32], strides = [1, 1, 1]} : vector<4x8x32xf32> to vector<1x8x32xf32>
    %59 = vector.shape_cast %58 : vector<1x8x32xf32> to vector<8x32xf32>
    %cst_22 = arith.constant dense<0.000000e+00> : vector<8x32xf32>
    %60 = tpu.matmul %57, %59, %cst_22 {dimension_numbers = #tpu.dot_dimension_numbers<[1], [0], [0], [1], [0, 0, 1, 1], [], []>} : vector<8x8xf32>, vector<8x32xf32>, vector<8x32xf32> -> vector<8x32xf32>
    %61 = arith.addf %55, %60 : vector<8x32xf32>
    %62 = vector.extract_strided_slice %48 {offsets = [2, 0, 0], sizes = [1, 8, 8], strides = [1, 1, 1]} : vector<4x8x8xf32> to vector<1x8x8xf32>
    %63 = vector.shape_cast %62 : vector<1x8x8xf32> to vector<8x8xf32>
    %64 = vector.extract_strided_slice %25 {offsets = [2, 0, 0], sizes = [1, 8, 32], strides = [1, 1, 1]} : vector<4x8x32xf32> to vector<1x8x32xf32>
    %65 = vector.shape_cast %64 : vector<1x8x32xf32> to vector<8x32xf32>
    %cst_23 = arith.constant dense<0.000000e+00> : vector<8x32xf32>
    %66 = tpu.matmul %63, %65, %cst_23 {dimension_numbers = #tpu.dot_dimension_numbers<[1], [0], [0], [1], [0, 0, 1, 1], [], []>} : vector<8x8xf32>, vector<8x32xf32>, vector<8x32xf32> -> vector<8x32xf32>
    %67 = arith.addf %61, %66 : vector<8x32xf32>
    %68 = vector.extract_strided_slice %48 {offsets = [3, 0, 0], sizes = [1, 8, 8], strides = [1, 1, 1]} : vector<4x8x8xf32> to vector<1x8x8xf32>
    %69 = vector.shape_cast %68 : vector<1x8x8xf32> to vector<8x8xf32>
    %70 = vector.extract_strided_slice %25 {offsets = [3, 0, 0], sizes = [1, 8, 32], strides = [1, 1, 1]} : vector<4x8x32xf32> to vector<1x8x32xf32>
    %71 = vector.shape_cast %70 : vector<1x8x32xf32> to vector<8x32xf32>
    %cst_24 = arith.constant dense<0.000000e+00> : vector<8x32xf32>
    %72 = tpu.matmul %69, %71, %cst_24 {dimension_numbers = #tpu.dot_dimension_numbers<[1], [0], [0], [1], [0, 0, 1, 1], [], []>} : vector<8x8xf32>, vector<8x32xf32>, vector<8x32xf32> -> vector<8x32xf32>
    %73 = arith.addf %67, %72 : vector<8x32xf32>
    %74 = vector.broadcast %26 : vector<1x32xf32> to vector<8x32xf32>
    %75 = arith.addf %73, %74 : vector<8x32xf32>
    %c0_25 = arith.constant 0 : index
    %c0_26 = arith.constant 0 : index
    %c0_27 = arith.constant 0 : index
    %76 = vector.load %arg6[%c0_25, %c0_26, %c0_27] : memref<2x8x32xf32, #tpu.memory_space<vmem>>, vector<1x8x32xf32>
    %77 = vector.shape_cast %76 : vector<1x8x32xf32> to vector<8x32xf32>
    %78 = vector.shape_cast %75 : vector<8x32xf32> to vector<1x8x32xf32>
    tpu.vector_store %arg6[%c0_25, %c0_26, %c0_27], %78 {strides = array<i32>} : memref<2x8x32xf32, #tpu.memory_space<vmem>>, vector<1x8x32xf32>,
    %79 = vector.extract_strided_slice %24 {offsets = [8, 0], sizes = [8, 96], strides = [1, 1]} : vector<16x96xf32> to vector<8x96xf32>
    %80 = vector.extract_strided_slice %79 {offsets = [0, 0], sizes = [8, 32], strides = [1, 1]} : vector<8x96xf32> to vector<8x32xf32>
    %81 = vector.shape_cast %80 : vector<8x32xf32> to vector<8x4x8xf32>
    %82 = tpu.transpose %81, [1, 0, 2] : vector<8x4x8xf32> -> vector<4x8x8xf32>
    %83 = vector.extract_strided_slice %79 {offsets = [0, 32], sizes = [8, 32], strides = [1, 1]} : vector<8x96xf32> to vector<8x32xf32>
    %84 = vector.shape_cast %83 : vector<8x32xf32> to vector<8x4x8xf32>
    %85 = tpu.transpose %84, [1, 0, 2] : vector<8x4x8xf32> -> vector<4x8x8xf32>
    %86 = vector.extract_strided_slice %79 {offsets = [0, 64], sizes = [8, 32], strides = [1, 1]} : vector<8x96xf32> to vector<8x32xf32>
    %87 = vector.shape_cast %86 : vector<8x32xf32> to vector<8x4x8xf32>
    %88 = tpu.transpose %87, [1, 0, 2] : vector<8x4x8xf32> -> vector<4x8x8xf32>
    "tpu.trace_start"() <{level = 10 : i32, message = "hnd,hmd->hnm"}> : () -> ()
    %cst_28 = arith.constant dense<0.000000e+00> : vector<4x8x8xf32>
    %89 = tpu.matmul %82, %85, %cst_28 {dimension_numbers = #tpu.dot_dimension_numbers<[2], [2], [1], [1], [0, 0, 0, 1, 1, 1], [0], [0]>} : vector<4x8x8xf32>, vector<4x8x8xf32>, vector<4x8x8xf32> -> vector<4x8x8xf32>
    "tpu.trace_stop"() : () -> ()
    %cst_29 = arith.constant dense<0xFF800000> : vector<4x8xf32>
    %90 = vector.multi_reduction <maximumf>, %89, %cst_29 [2] : vector<4x8x8xf32> to vector<4x8xf32>
    %91 = vector.shape_cast %90 : vector<4x8xf32> to vector<4x8x1xf32>
    %92 = vector.broadcast %91 : vector<4x8x1xf32> to vector<4x8x8xf32>
    %93 = arith.subf %89, %92 : vector<4x8x8xf32>
    %94 = math.exp %93 : vector<4x8x8xf32>
    %cst_30 = arith.constant dense<0.000000e+00> : vector<4x8xf32>
    %95 = vector.multi_reduction <add>, %94, %cst_30 [2] : vector<4x8x8xf32> to vector<4x8xf32>
    %96 = vector.shape_cast %95 : vector<4x8xf32> to vector<4x8x1xf32>
    "tpu.trace_start"() <{level = 10 : i32, message = "hnm,hmd->hnd"}> : () -> ()
    %cst_31 = arith.constant dense<0.000000e+00> : vector<4x8x8xf32>
    %97 = tpu.matmul %94, %88, %cst_31 {dimension_numbers = #tpu.dot_dimension_numbers<[2], [1], [1], [2], [0, 0, 0, 1, 1, 2], [0], [0]>} : vector<4x8x8xf32>, vector<4x8x8xf32>, vector<4x8x8xf32> -> vector<4x8x8xf32>
    "tpu.trace_stop"() : () -> ()
    %98 = tpu.reciprocal %96 : vector<4x8x1xf32> -> vector<4x8x1xf32>
    %99 = vector.broadcast %98 : vector<4x8x1xf32> to vector<4x8x8xf32>
    %100 = arith.mulf %97, %99 : vector<4x8x8xf32>
    %cst_32 = arith.constant 0.000000e+00 : f32
    %101 = vector.broadcast %cst_32 : f32 to vector<8x32xf32>
    %102 = vector.extract_strided_slice %100 {offsets = [0, 0, 0], sizes = [1, 8, 8], strides = [1, 1, 1]} : vector<4x8x8xf32> to vector<1x8x8xf32>
    %103 = vector.shape_cast %102 : vector<1x8x8xf32> to vector<8x8xf32>
    %104 = vector.extract_strided_slice %25 {offsets = [0, 0, 0], sizes = [1, 8, 32], strides = [1, 1, 1]} : vector<4x8x32xf32> to vector<1x8x32xf32>
    %105 = vector.shape_cast %104 : vector<1x8x32xf32> to vector<8x32xf32>
    %cst_33 = arith.constant dense<0.000000e+00> : vector<8x32xf32>
    %106 = tpu.matmul %103, %105, %cst_33 {dimension_numbers = #tpu.dot_dimension_numbers<[1], [0], [0], [1], [0, 0, 1, 1], [], []>} : vector<8x8xf32>, vector<8x32xf32>, vector<8x32xf32> -> vector<8x32xf32>
    %107 = arith.addf %101, %106 : vector<8x32xf32>
    %108 = vector.extract_strided_slice %100 {offsets = [1, 0, 0], sizes = [1, 8, 8], strides = [1, 1, 1]} : vector<4x8x8xf32> to vector<1x8x8xf32>
    %109 = vector.shape_cast %108 : vector<1x8x8xf32> to vector<8x8xf32>
    %110 = vector.extract_strided_slice %25 {offsets = [1, 0, 0], sizes = [1, 8, 32], strides = [1, 1, 1]} : vector<4x8x32xf32> to vector<1x8x32xf32>
    %111 = vector.shape_cast %110 : vector<1x8x32xf32> to vector<8x32xf32>
    %cst_34 = arith.constant dense<0.000000e+00> : vector<8x32xf32>
    %112 = tpu.matmul %109, %111, %cst_34 {dimension_numbers = #tpu.dot_dimension_numbers<[1], [0], [0], [1], [0, 0, 1, 1], [], []>} : vector<8x8xf32>, vector<8x32xf32>, vector<8x32xf32> -> vector<8x32xf32>
    %113 = arith.addf %107, %112 : vector<8x32xf32>
    %114 = vector.extract_strided_slice %100 {offsets = [2, 0, 0], sizes = [1, 8, 8], strides = [1, 1, 1]} : vector<4x8x8xf32> to vector<1x8x8xf32>
    %115 = vector.shape_cast %114 : vector<1x8x8xf32> to vector<8x8xf32>
    %116 = vector.extract_strided_slice %25 {offsets = [2, 0, 0], sizes = [1, 8, 32], strides = [1, 1, 1]} : vector<4x8x32xf32> to vector<1x8x32xf32>
    %117 = vector.shape_cast %116 : vector<1x8x32xf32> to vector<8x32xf32>
    %cst_35 = arith.constant dense<0.000000e+00> : vector<8x32xf32>
    %118 = tpu.matmul %115, %117, %cst_35 {dimension_numbers = #tpu.dot_dimension_numbers<[1], [0], [0], [1], [0, 0, 1, 1], [], []>} : vector<8x8xf32>, vector<8x32xf32>, vector<8x32xf32> -> vector<8x32xf32>
    %119 = arith.addf %113, %118 : vector<8x32xf32>
    %120 = vector.extract_strided_slice %100 {offsets = [3, 0, 0], sizes = [1, 8, 8], strides = [1, 1, 1]} : vector<4x8x8xf32> to vector<1x8x8xf32>
    %121 = vector.shape_cast %120 : vector<1x8x8xf32> to vector<8x8xf32>
    %122 = vector.extract_strided_slice %25 {offsets = [3, 0, 0], sizes = [1, 8, 32], strides = [1, 1, 1]} : vector<4x8x32xf32> to vector<1x8x32xf32>
    %123 = vector.shape_cast %122 : vector<1x8x32xf32> to vector<8x32xf32>
    %cst_36 = arith.constant dense<0.000000e+00> : vector<8x32xf32>
    %124 = tpu.matmul %121, %123, %cst_36 {dimension_numbers = #tpu.dot_dimension_numbers<[1], [0], [0], [1], [0, 0, 1, 1], [], []>} : vector<8x8xf32>, vector<8x32xf32>, vector<8x32xf32> -> vector<8x32xf32>
    %125 = arith.addf %119, %124 : vector<8x32xf32>
    %126 = vector.broadcast %26 : vector<1x32xf32> to vector<8x32xf32>
    %127 = arith.addf %125, %126 : vector<8x32xf32>
    %c1 = arith.constant 1 : index
    %c0_37 = arith.constant 0 : index
    %c0_38 = arith.constant 0 : index
    %128 = vector.load %arg6[%c1, %c0_37, %c0_38] : memref<2x8x32xf32, #tpu.memory_space<vmem>>, vector<1x8x32xf32>
    %129 = vector.shape_cast %128 : vector<1x8x32xf32> to vector<8x32xf32>
    %130 = vector.shape_cast %127 : vector<8x32xf32> to vector<1x8x32xf32>
    tpu.vector_store %arg6[%c1, %c0_37, %c0_38], %130 {strides = array<i32>} : memref<2x8x32xf32, #tpu.memory_space<vmem>>, vector<1x8x32xf32>,
    return
  }
  func.func @transform_0(%arg0: i32) -> (i32, i32, i32) {
    %c0_i32 = arith.constant 0 : i32
    %c0_i32_0 = arith.constant 0 : i32
    %c0_i32_1 = arith.constant 0 : i32
    return %arg0, %c0_i32, %c0_i32_0 : i32, i32, i32
  }
  func.func @transform_1(%arg0: i32) -> (i32, i32) {
    %c0_i32 = arith.constant 0 : i32
    %c0_i32_0 = arith.constant 0 : i32
    %c0_i32_1 = arith.constant 0 : i32
    return %c0_i32, %c0_i32_0 : i32, i32
  }
  func.func @transform_2(%arg0: i32) -> (i32, i32) {
    %c0_i32 = arith.constant 0 : i32
    %c0_i32_0 = arith.constant 0 : i32
    %c0_i32_1 = arith.constant 0 : i32
    return %c0_i32, %c0_i32_0 : i32, i32
  }
  func.func @transform_3(%arg0: i32) -> (i32, i32, i32) {
    %c0_i32 = arith.constant 0 : i32
    %c0_i32_0 = arith.constant 0 : i32
    %c0_i32_1 = arith.constant 0 : i32
    %c0_i32_2 = arith.constant 0 : i32
    return %c0_i32, %c0_i32_0, %c0_i32_1 : i32, i32, i32
  }
  func.func @transform_4(%arg0: i32) -> (i32, i32) {
    %c0_i32 = arith.constant 0 : i32
    %c0_i32_0 = arith.constant 0 : i32
    %c0_i32_1 = arith.constant 0 : i32
    return %c0_i32, %c0_i32_0 : i32, i32
  }
  func.func @transform_5(%arg0: i32) -> (i32, i32, i32) {
    %c0_i32 = arith.constant 0 : i32
    %c0_i32_0 = arith.constant 0 : i32
    %c0_i32_1 = arith.constant 0 : i32
    return %arg0, %c0_i32, %c0_i32_0 : i32, i32, i32
  }
}

</mosaic_0001>

<bundles_post_ra>
// kernel: tpu_custom_call.1
= control target key start
LH: loop header
LB: loop body
LE: loop exit
PB: predicated region body
PF: predicated region fallthrough
CT: control target
= control target key end

     0   :  { %10 = vsyncpa [#allocation3], 0  ;;  %s3731_s0 = inlined_call_operand.hbm [shape: f32[2,8,32], index: 0, kind: input, shape index: {}]   ;;  %s3732_s1 = inlined_call_operand.hbm [shape: f32[32,96], index: 1, kind: input, shape index: {}]   ;;  %s3733_s2 = inlined_call_operand.vmem [shape: f32[1,96], index: 2, kind: input, shape index: {}]   ;;  %s3734_s3 = inlined_call_operand.hbm [shape: f32[4,8,32], index: 3, kind: input, shape index: {}]   ;;  %s3735_s4 = inlined_call_operand.vmem [shape: f32[1,32], index: 4, kind: input, shape index: {}]   ;;  %s3736_s5 = inlined_call_operand.hbm [shape: f32[2,8,32], index: 5, kind: output, shape index: {}]  }
   0x1   :  { %11 = vsyncpa [#allocation6], 0 }
   0x2   :  { %12 = vsyncpa [#allocation4], 0  ;;  %s3341_s18 = smov [#allocation5]   ;;  %s3342_s20 = smov [#allocation2]  }
   0x3   :  { %s30_s19 = sshll.u32 %s3341_s18, 4  ;;  %s18_s21 = sshll.u32 %s3342_s20, 4  ;;  %s31_s19 = int_to_ptr.vmem [resolvable:$true] %s30_s19  ;;  %s19_s21 = int_to_ptr.vmem [resolvable:$true] %s18_s21 }
   0x4   :  { %s3263_s22 = scalar_lea.vmem %s31_s19, 512  ;;  %p3268_p1 = scmp.lt.s32.totalorder %s31_s19, %s31_s19 }
   0x5   :  { %p3264_p0 = scmp.ne.s32.totalorder %s31_s19, %s3263_s22  ;;  %p3269_p2 = scmp.lt.s32.totalorder %s3263_s22, %s3263_s22 }
   0x7   :  { %p3270_p3 = por %p3269_p2, %p3268_p1 }
   0x9   :  { %p3271_p4 = pnand %p3270_p3, %p3264_p0 }
   0xb   :  { %3274 = shalt.err (!%p3271_p4)
}
   0xc   :  { %s3343_s23 = smov 128   ;;  %s3344_s24 = smov 8  }
   0xd   :  { %36 = dma.hbm_to_vmem [thread:$0]  %s3732_s1, 512, %s31_s19, [#allocation6], %s3343_s23, %s3343_s23, %s3344_s24  }
   0xe   :  { %s3283_s27 = scalar_lea.vmem %s19_s21, 256  ;;  %p3288_p6 = scmp.lt.s32.totalorder %s19_s21, %s19_s21 }
   0xf   :  { %p3284_p5 = scmp.ne.s32.totalorder %s19_s21, %s3283_s27  ;;  %p3289_p7 = scmp.lt.s32.totalorder %s3283_s27, %s3283_s27 }
  0x11   :  { %p3290_p8 = por %p3289_p7, %p3288_p6 }
  0x13   :  { %p3291_p9 = pnand %p3290_p8, %p3284_p5 }
  0x15   :  { %3294 = shalt.err (!%p3291_p9)
}
  0x16   :  { %24 = dma.hbm_to_vmem [thread:$0]  %s3731_s0, 256, %s19_s21, [#allocation3], %s3343_s23, %s3343_s23, %s3344_s24  }
  0x17   :  { %s3345_s30 = smov [#allocation7]  }
  0x18   :  { %s44_s6 = sshll.u32 %s3345_s30, 4  ;;  %s45_s6 = int_to_ptr.vmem [resolvable:$true] %s44_s6 }
  0x19   :  { %s3303_s7 = scalar_lea.vmem %s45_s6, 512  ;;  %p3308_p11 = scmp.lt.s32.totalorder %s45_s6, %s45_s6 }
  0x1a   :  { %p3304_p10 = scmp.ne.s32.totalorder %s45_s6, %s3303_s7  ;;  %p3309_p12 = scmp.lt.s32.totalorder %s3303_s7, %s3303_s7 }
  0x1c   :  { %p3310_p13 = por %p3309_p12, %p3308_p11 }
  0x1e   :  { %p3311_p0 = pnand %p3310_p13, %p3304_p10 }
  0x20   :  { %3314 = shalt.err (!%p3311_p0)
}
  0x21   :  { %50 = dma.hbm_to_vmem [thread:$0]  %s3734_s3, 512, %s45_s6, [#allocation6], %s3343_s23, %s3343_s23, %s3344_s24  }
  0x22   :  { %3335 = dma.done.wait [#allocation3], 256  }
  0x23   :  { %3336 = vsyncadd [#allocation3], 4294967040 }
  0x24   :  { %3337 = dma.done.wait [#allocation6], 1024  }
  0x25   :  { %3338 = vsyncadd [#allocation6], 4294966272  ;;  %vm64_vm0 = vcmask 261120   ;;  %v62_v0 = vld [vmem:[#allocation2] sm:$0xff]  ;;  %v63_v1 = vld [vmem:[#allocation2 + $0x8] sm:$0xff]  ;;  %s3346_s9 = smov 112   ;;  %v204_v39 = vlaneseq }
  0x26   :  { %v65_v2 = vsel %vm64_vm0, %v62_v0, 0.0  ;;  %v68_v3 = vsel %vm64_vm0, %v63_v1, 0.0  ;;  %v95_v14 = vld [vmem:[#allocation5 + $0x18] sm:$0xff]  ;;  %v94_v15 = vld [vmem:[#allocation5 + $0x10] sm:$0xff]  ;;  %v93_v16 = vld [vmem:[#allocation5 + $0x8] sm:$0xff]  ;;  %s3347_s10 = smov 120  }
  0x27   :  { %66 = vadd.xlane.f32.xlu0 %v65_v2  ;;  %3073 = vmatprep.subr.mxu0 %v95_v14  ;;  %v92_v17 = vld [vmem:[#allocation5] sm:$0xff]  ;;  %v2971_v28 = vld [vmem:[%s3733_s2] ss:$0 sm:$0xff]  ;;  %s3348_s11 = smov 104   ;;  %s3349_s12 = smov 96   ;;  %v3350_v35 = vmov 0.0  }
  0x28   :  { %3074 = vmatpush3.msra.mxu0 %v95_v14  ;;  %3084 = vmatprep.subr.mxu1 %v3350_v35  ;;  %s3351_s2 = smov 64   ;;  %vm3352_vm1 = vmmov 0   ;;  %v3353_v37 = vmov 1983009808   ;;  %v205_v41 = vshrl.u32 %v204_v39, 7  ;;  %vm631_vm2 = vcmask 64512  }
  0x29   :  { %3075 = vmatprep.subr.mxu0 %v94_v15  ;;  %3086 = vmatprep.mubr.msk.f32.mxu1 %vm3352_vm1, %v3350_v35  ;;  %v202_v38 = vunpack.c.l.s4 %v3353_v37  ;;  %v3354_v42 = vmov 1934713408  }
  0x2a   :  { %3076 = vmatpush3.msra.mxu0 %v94_v15  ;;  %v234_v43 = vunpack.c.l.s4 %v3354_v42 }
  0x2b   :  { %69 = vadd.xlane.f32.xlu0 %v68_v3  ;;  %3077 = vmatprep.subr.mxu0 %v93_v16  ;;  %v203_v40 = vunpack.c.0.s8 %v202_v38 }
  0x2c   :  { %3078 = vmatpush3.msra.mxu0 %v93_v16  ;;  %v235_v49 = vunpack.c.0.s8 %v234_v43 }
  0x2d   :  { %3079 = vmatprep.subr.mxu0 %v92_v17  ;;  %v3442_v46 = vsub.s32 %v203_v40, %v205_v41 }
  0x2e   :  { %3080 = vmatpush3.msra.mxu0 %v92_v17  ;;  %v3450_v55 = vsub.s32 %v235_v49, %v205_v41 }
  0x2f   :  { %3094 = vmatprep.subr.mxu0 %v3350_v35 }
  0xb0   :  { %v67_v4 = vpop.xlane.xlu0 %66 }
  0xb1   :  { %v72_v5 = vmul.f32 0.03125, %v67_v4 }
  0xb3   :  { %v74_v6 = vsub.f32 %v62_v0, %v72_v5 }
  0xb4   :  { %v70_v7 = vpop.xlane.xlu0 %69 }
  0xb5   :  { %v73_v8 = vmul.f32 0.03125, %v70_v7  ;;  %v76_v9 = vmul.f32 %v74_v6, %v74_v6 }
  0xb7   :  { %v75_v10 = vsub.f32 %v63_v1, %v73_v8  ;;  %v78_v11 = vsel %vm64_vm0, %v76_v9, 0.0 }
  0xb8   :  { %79 = vadd.xlane.f32.xlu1 %v78_v11 }
  0xb9   :  { %v77_v12 = vmul.f32 %v75_v10, %v75_v10 }
  0xbb   :  { %v81_v13 = vsel %vm64_vm0, %v77_v12, 0.0 }
  0xbc   :  { %82 = vadd.xlane.f32.xlu1 %v81_v13 }
 0x141   :  { %v80_v18 = vpop.xlane.xlu1 %79 }
 0x142   :  { %v84_v19 = vmul.f32 0.03125, %v80_v18 }
 0x144   :  { %v86_v20 = vadd.f32 1e-05, %v84_v19 }
 0x145   :  { %v83_v21 = vpop.xlane.xlu1 %82 }
 0x146   :  { %3219 = vrsqrt.f32 %v86_v20  ;;  %v85_v22 = vmul.f32 0.03125, %v83_v21 }
 0x148   :  { %v87_v23 = vadd.f32 1e-05, %v85_v22 }
 0x14a   :  { %3221 = vrsqrt.f32 %v87_v23 }
 0x153   :  { %v3220_v24 = vpop.eup %3219 }
 0x154   :  { %v90_v25 = vmul.f32 %v3220_v24, %v74_v6 }
 0x156   :  { %3081 = vmatprep.mubr.msk.f32.mxu0 %vm64_vm0, %v90_v25 }
 0x157   :  { %v3222_v26 = vpop.eup %3221 }
 0x158   :  { %v91_v27 = vmul.f32 %v3222_v26, %v75_v10 }
 0x15a   :  { %3082 = vmatmul.mubr.msk.f32.vlgmr.msra.gmra.mxu0 %vm64_vm0, %v91_v27 }
 0x15b   :  { %3096 = vmatprep.mubr.msk.f32.mxu0 %vm3352_vm1, %v3350_v35 }
 0x21a   :  { %v3083_v29 = vpop.f32.mrf.mxu0 }
 0x21b   :  { %v3413_v30 = vadd.f32 %v3083_v29, %v2971_v28 }
 0x21c   :  { %v175_v31 = vpop.f32.mrf.mxu0 }
 0x21d   :  { %v176_v32 = vadd.f32 %v2971_v28, %v175_v31 }
 0x21f   :  { %193 = vrot.lane.b32.xlu1 %v176_v32, %s3346_s9  ;;  %190 = vrot.lane.b32.xlu0 %v176_v32, %s3347_s10 }
 0x223   :  { %196 = vrot.lane.b32.xlu1 %v176_v32, %s3348_s11 }
 0x227   :  { %335 = vrot.lane.b32.xlu1 %v176_v32, %s3349_s12 }
 0x291   :  { %v3419_v33 = vpop.permute.xlu1 %193  ;;  %v3421_v34 = vpop.permute.xlu0 %190 }
 0x292   :  { %339 = vrot.lane.b32.xlu1 %v3419_v33, %s3349_s12  ;;  %337 = vrot.lane.b32.xlu0 %v3421_v34, %s3349_s12  ;;  %v199_v47 = vcombine.low %v176_v32, %v3419_v33  ;;  %v200_v48 = vcombine.high %v176_v32, %v3419_v33 }
 0x294   :  { %v207_v53 = vrot.slane %v199_v47, %v3442_v46  ;;  %v214_v54 = vrot.slane %v200_v48, %v3442_v46 }
 0x295   :  { %v3429_v36 = vpop.permute.xlu1 %196 }
 0x296   :  { %483 = vrot.lane.b32.xlu1 %v176_v32, %s3351_s2  ;;  %341 = vrot.lane.b32.xlu0 %v3429_v36, %s3349_s12  ;;  %v215_v44 = vcombine.low %v3421_v34, %v3429_v36  ;;  %v216_v45 = vcombine.high %v3421_v34, %v3429_v36 }
 0x298   :  { %v223_v50 = vrot.slane %v215_v44, %v3442_v46  ;;  %v230_v51 = vrot.slane %v216_v45, %v3442_v46 }
 0x299   :  { %v336_v52 = vpop.permute.xlu1 %335 }
 0x29a   :  { %v231_v56 = vcombine.low %v207_v53, %v223_v50  ;;  %v232_v57 = vcombine.high %v207_v53, %v223_v50  ;;  %v247_v58 = vcombine.low %v214_v54, %v230_v51  ;;  %v248_v59 = vcombine.high %v214_v54, %v230_v51 }
 0x29c   :  { %v239_v0 = vrot.slane %v231_v56, %v3450_v55  ;;  %v246_v1 = vrot.slane %v232_v57, %v3450_v55  ;;  %v255_v2 = vrot.slane %v247_v58, %v3450_v55  ;;  %v262_v3 = vrot.slane %v248_v59, %v3450_v55 }
 0x29e   :  { %v267_v11 = vcombine.low %v239_v0, %v246_v1  ;;  %v2974_v12 = vcombine.high %v239_v0, %v246_v1  ;;  %v283_v13 = vcombine.low %v255_v2, %v262_v3  ;;  %v2975_v14 = vcombine.high %v255_v2, %v262_v3 }
 0x2a0   :  { %v274_v23 = vrot.slane %v267_v11, %v3442_v46  ;;  %v282_v24 = vrot.slane %v2974_v12, %v3442_v46  ;;  %v290_v25 = vrot.slane %v283_v13, %v3442_v46  ;;  %v298_v26 = vrot.slane %v2975_v14, %v3442_v46 }
 0x2a2   :  { %v299_v40 = vcombine.low %v274_v23, %v282_v24  ;;  %v300_v41 = vcombine.high %v274_v23, %v282_v24  ;;  %v315_v42 = vcombine.low %v290_v25, %v298_v26  ;;  %v316_v43 = vcombine.high %v290_v25, %v298_v26 }
 0x2a4   :  { %v307_v53 = vrot.slane %v299_v40, %v3450_v55  ;;  %v323_v54 = vrot.slane %v315_v42, %v3450_v55  ;;  %v314_v56 = vrot.slane %v300_v41, %v3450_v55  ;;  %v330_v57 = vrot.slane %v316_v43, %v3450_v55 }
 0x2a6   :  { %v334_v1 = vcombine.high %v314_v56, %v330_v57 }
 0x304   :  { %v340_v60 = vpop.permute.xlu1 %339  ;;  %v338_v61 = vpop.permute.xlu0 %337 }
 0x305   :  { %v347_v62 = vcombine.low %v336_v52, %v340_v60  ;;  %v348_v63 = vcombine.high %v336_v52, %v340_v60  ;;  %v331_v60 = vcombine.low %v307_v53, %v323_v54 }
 0x307   :  { %v355_v7 = vrot.slane %v347_v62, %v3442_v46  ;;  %v362_v8 = vrot.slane %v348_v63, %v3442_v46  ;;  %v332_v63 = vcombine.high %v307_v53, %v323_v54 }
 0x308   :  { %v342_v4 = vpop.permute.xlu0 %341  ;;  %v484_v14 = vpop.permute.xlu1 %483 }
 0x309   :  { %v363_v5 = vcombine.low %v338_v61, %v342_v4  ;;  %v364_v6 = vcombine.high %v338_v61, %v342_v4  ;;  %v333_v61 = vcombine.low %v314_v56, %v330_v57 }
 0x30b   :  { %v371_v9 = vrot.slane %v363_v5, %v3442_v46  ;;  %v378_v10 = vrot.slane %v364_v6, %v3442_v46 }
 0x30d   :  { %v379_v15 = vcombine.low %v355_v7, %v371_v9  ;;  %v380_v16 = vcombine.high %v355_v7, %v371_v9  ;;  %v395_v17 = vcombine.low %v362_v8, %v378_v10  ;;  %v396_v18 = vcombine.high %v362_v8, %v378_v10 }
 0x30f   :  { %v387_v19 = vrot.slane %v379_v15, %v3450_v55  ;;  %v394_v20 = vrot.slane %v380_v16, %v3450_v55  ;;  %v403_v21 = vrot.slane %v395_v17, %v3450_v55  ;;  %v410_v22 = vrot.slane %v396_v18, %v3450_v55 }
 0x311   :  { %v415_v27 = vcombine.low %v387_v19, %v394_v20  ;;  %v2976_v28 = vcombine.high %v387_v19, %v394_v20  ;;  %v431_v29 = vcombine.low %v403_v21, %v410_v22  ;;  %v2977_v31 = vcombine.high %v403_v21, %v410_v22 }
 0x313   :  { %v422_v32 = vrot.slane %v415_v27, %v3442_v46  ;;  %v430_v37 = vrot.slane %v2976_v28, %v3442_v46  ;;  %v438_v38 = vrot.slane %v431_v29, %v3442_v46  ;;  %v446_v39 = vrot.slane %v2977_v31, %v3442_v46 }
 0x315   :  { %v447_v44 = vcombine.low %v422_v32, %v430_v37  ;;  %v448_v45 = vcombine.high %v422_v32, %v430_v37  ;;  %v463_v47 = vcombine.low %v438_v38, %v446_v39  ;;  %v464_v48 = vcombine.high %v438_v38, %v446_v39 }
 0x317   :  { %v455_v49 = vrot.slane %v447_v44, %v3450_v55  ;;  %v471_v50 = vrot.slane %v463_v47, %v3450_v55  ;;  %v462_v51 = vrot.slane %v448_v45, %v3450_v55  ;;  %v478_v52 = vrot.slane %v464_v48, %v3450_v55 }
 0x319   :  { %v479_v58 = vcombine.low %v455_v49, %v471_v50  ;;  %v481_v59 = vcombine.low %v462_v51, %v478_v52  ;;  %v480_v62 = vcombine.high %v455_v49, %v471_v50  ;;  %v482_v0 = vcombine.high %v462_v51, %v478_v52 }
 0x31b   :  { %3085 = vmatpush3.xpose.msk.msra.mxu1 %vm631_vm2, %v479_v58  ;;  %3095 = vmatpush3.xpose.msk.msra.mxu0 %vm631_vm2, %v481_v59 }
 0x31c   :  { %3089 = vmatprep.subr.mxu1 %v3350_v35  ;;  %3104 = vmatprep.subr.mxu0 %v3350_v35 }
 0x31e   :  { %3087 = vmatmul.mubr.msk.f32.vlgmr.msra.gmra.mxu1 %vm631_vm2, %v331_v60  ;;  %3097 = vmatmul.mubr.msk.f32.vlgmr.msra.gmra.mxu0 %vm631_vm2, %v333_v61 }
 0x31f   :  { %3090 = vmatpush3.xpose.msk.msra.mxu1 %vm631_vm2, %v480_v62  ;;  %3091 = vmatprep.mubr.msk.f32.mxu1 %vm3352_vm1, %v3350_v35 }
 0x320   :  { %3099 = vmatprep.subr.mxu1 %v3350_v35  ;;  %3106 = vmatprep.mubr.msk.f32.mxu0 %vm3352_vm1, %v3350_v35 }
 0x322   :  { %3092 = vmatmul.mubr.msk.f32.vlgmr.msra.gmra.mxu1 %vm631_vm2, %v332_v63 }
 0x323   :  { %3100 = vmatpush3.xpose.msk.msra.mxu1 %vm631_vm2, %v482_v0  ;;  %3101 = vmatprep.mubr.msk.f32.mxu1 %vm3352_vm1, %v3350_v35 }
 0x324   :  { %3109 = vmatprep.subr.mxu1 %v3350_v35 }
 0x326   :  { %3102 = vmatmul.mubr.msk.f32.vlgmr.msra.gmra.mxu1 %vm631_vm2, %v334_v1 }
 0x327   :  { %3111 = vmatprep.mubr.msk.f32.mxu1 %vm3352_vm1, %v3350_v35 }
 0x3de   :  { %v704_v2 = vpop.f32.mrf.mxu1  ;;  %v856_v3 = vpop.f32.mrf.mxu0 }
 0x3df   :  { %v942_v4 = vsel %vm631_vm2, %v856_v3, -inf  ;;  %v936_v5 = vsel %vm631_vm2, %v704_v2, -inf }
 0x3e0   :  { %943 = vmax.xlane.f32.xlu0 %v942_v4  ;;  %v3098_v6 = vpop.f32.mrf.mxu0  ;;  %937 = vmax.xlane.f32.xlu1 %v936_v5  ;;  %v3088_v7 = vpop.f32.mrf.mxu1 }
 0x3e2   :  { %v780_v8 = vpop.f32.mrf.mxu1 }
 0x3e3   :  { %v939_v9 = vsel %vm631_vm2, %v780_v8, -inf }
 0x3e4   :  { %940 = vmax.xlane.f32.xlu0 %v939_v9  ;;  %v3093_v10 = vpop.f32.mrf.mxu1 }
 0x3e6   :  { %v932_v11 = vpop.f32.mrf.mxu1 }
 0x3e7   :  { %v945_v12 = vsel %vm631_vm2, %v932_v11, -inf }
 0x3e8   :  { %946 = vmax.xlane.f32.xlu0 %v945_v12  ;;  %v3103_v13 = vpop.f32.mrf.mxu1 }
 0x3f1   :  { %487 = vrot.lane.b32.xlu1 %v3419_v33, %s3351_s2 }
 0x3f5   :  { %489 = vrot.lane.b32.xlu1 %v3429_v36, %s3351_s2 }
 0x3f9   :  { %1575 = vrot.lane.b32.xlu1 %v3413_v30, %s3347_s10 }
 0x3fd   :  { %1581 = vrot.lane.b32.xlu1 %v3413_v30, %s3348_s11 }
 0x3fe   :  { %485 = vrot.lane.b32.xlu0 %v3421_v34, %s3351_s2 }
 0x402   :  { %1578 = vrot.lane.b32.xlu0 %v3413_v30, %s3346_s9 }
 0x469   :  { %v944_v15 = vpop.xlane.xlu0 %943  ;;  %v938_v16 = vpop.xlane.xlu1 %937 }
 0x46a   :  { %v948_v17 = vsub.f32 %v704_v2, %v938_v16  ;;  %v950_v19 = vsub.f32 %v856_v3, %v944_v15 }
 0x46c   :  { %v952_v33 = vmul.f32 1.442695, %v948_v17  ;;  %v956_v23 = vmul.f32 1.442695, %v950_v19  ;;  %v3566_v17 = vld [vmem:[#allocation7 + $0x8] sm:$0xff] }
 0x46d   :  { %v941_v18 = vpop.xlane.xlu0 %940  ;;  %v488_v20 = vpop.permute.xlu1 %487 }
 0x46e   :  { %v949_v36 = vsub.f32 %v780_v8, %v941_v18  ;;  %3223 = vpow2.f32 %v952_v33  ;;  %v495_v25 = vcombine.low %v484_v14, %v488_v20  ;;  %v496_v34 = vcombine.high %v484_v14, %v488_v20  ;;  %v3568_v33 = vld [vmem:[#allocation7] sm:$0xff] }
 0x470   :  { %v954_v21 = vmul.f32 1.442695, %v949_v36  ;;  %v503_v32 = vrot.slane %v495_v25, %v3442_v46  ;;  %v510_v37 = vrot.slane %v496_v34, %v3442_v46 }
 0x471   :  { %v947_v22 = vpop.xlane.xlu0 %946  ;;  %v490_v27 = vpop.permute.xlu1 %489 }
 0x472   :  { %3225 = vpow2.f32 %v954_v21  ;;  %v951_v24 = vsub.f32 %v932_v11, %v947_v22 }
 0x473   :  { %3227 = vpow2.f32 %v956_v23 }
 0x474   :  { %v958_v26 = vmul.f32 1.442695, %v951_v24 }
 0x475   :  { %v486_v28 = vpop.permute.xlu0 %485  ;;  %v3552_v14 = vpop.permute.xlu1 %1575 }
 0x476   :  { %v511_v29 = vcombine.low %v486_v28, %v490_v27  ;;  %v512_v31 = vcombine.high %v486_v28, %v490_v27  ;;  %3229 = vpow2.f32 %v958_v26 }
 0x478   :  { %v519_v38 = vrot.slane %v511_v29, %v3442_v46  ;;  %v526_v39 = vrot.slane %v512_v31, %v3442_v46 }
 0x479   :  { %v3556_v15 = vpop.permute.xlu0 %1578  ;;  %v3560_v16 = vpop.permute.xlu1 %1581 }
 0x47a   :  { %v527_v40 = vcombine.low %v503_v32, %v519_v38  ;;  %v528_v41 = vcombine.high %v503_v32, %v519_v38  ;;  %v543_v42 = vcombine.low %v510_v37, %v526_v39  ;;  %v544_v43 = vcombine.high %v510_v37, %v526_v39 }
 0x47b   :  { %v3224_v49 = vpop.eup %3223  ;;  %v1600_v26 = vcombine.low %v3552_v14, %v3560_v16  ;;  %v1584_v27 = vcombine.low %v3413_v30, %v3556_v15  ;;  %v1601_v31 = vcombine.high %v3552_v14, %v3560_v16  ;;  %v1585_v32 = vcombine.high %v3413_v30, %v3556_v15 }
 0x47c   :  { %v535_v44 = vrot.slane %v527_v40, %v3450_v55  ;;  %v542_v45 = vrot.slane %v528_v41, %v3450_v55  ;;  %v551_v47 = vrot.slane %v543_v42, %v3450_v55  ;;  %v558_v48 = vrot.slane %v544_v43, %v3450_v55 }
 0x47d   :  { %v960_v60 = vsel %vm631_vm2, %v3224_v49, 0.0  ;;  %v1608_v39 = vrot.slane %v1600_v26, %v3442_v46  ;;  %v1592_v40 = vrot.slane %v1584_v27, %v3442_v46  ;;  %v1615_v43 = vrot.slane %v1601_v31, %v3442_v46  ;;  %v3608_v27 = vld [vmem:[#allocation7 + $0x10] sm:$0xff] }
 0x47e   :  { %v563_v50 = vcombine.low %v535_v44, %v542_v45  ;;  %v2978_v51 = vcombine.high %v535_v44, %v542_v45  ;;  %v579_v52 = vcombine.low %v551_v47, %v558_v48  ;;  %v2979_v53 = vcombine.high %v551_v47, %v558_v48  ;;  %961 = vadd.xlane.f32.xlu0 %v960_v60 }
 0x47f   :  { %v3226_v54 = vpop.eup %3225  ;;  %v1599_v44 = vrot.slane %v1585_v32, %v3442_v46 }
 0x480   :  { %v570_v56 = vrot.slane %v563_v50, %v3442_v46  ;;  %v578_v57 = vrot.slane %v2978_v51, %v3442_v46  ;;  %v586_v58 = vrot.slane %v579_v52, %v3442_v46  ;;  %v594_v59 = vrot.slane %v2979_v53, %v3442_v46  ;;  %v3228_v63 = vpop.eup %3227 }
 0x481   :  { %v963_v61 = vsel %vm631_vm2, %v3226_v54, 0.0  ;;  %v966_v4 = vsel %vm631_vm2, %v3228_v63, 0.0  ;;  %v1616_v50 = vcombine.low %v1592_v40, %v1608_v39  ;;  %v1617_v51 = vcombine.high %v1592_v40, %v1608_v39 }
 0x482   :  { %v595_v62 = vcombine.low %v570_v56, %v578_v57  ;;  %964 = vadd.xlane.f32.xlu1 %v963_v61  ;;  %v611_v1 = vcombine.low %v586_v58, %v594_v59  ;;  %v596_v2 = vcombine.high %v570_v56, %v578_v57  ;;  %v612_v6 = vcombine.high %v586_v58, %v594_v59 }
 0x483   :  { %v3230_v3 = vpop.eup %3229  ;;  %967 = vadd.xlane.f32.xlu0 %v966_v4  ;;  %v1632_v52 = vcombine.low %v1599_v44, %v1615_v43  ;;  %v1633_v53 = vcombine.high %v1599_v44, %v1615_v43  ;;  %v1624_v59 = vrot.slane %v1616_v50, %v3450_v55  ;;  %v1631_v60 = vrot.slane %v1617_v51, %v3450_v55 }
 0x484   :  { %v603_v0 = vrot.slane %v595_v62, %v3450_v55  ;;  %v619_v5 = vrot.slane %v611_v1, %v3450_v55  ;;  %v610_v7 = vrot.slane %v596_v2, %v3450_v55  ;;  %v969_v8 = vsel %vm631_vm2, %v3230_v3, 0.0 }
 0x485   :  { %v626_v11 = vrot.slane %v612_v6, %v3450_v55  ;;  %v1640_v61 = vrot.slane %v1632_v52, %v3450_v55  ;;  %v1647_v62 = vrot.slane %v1633_v53, %v3450_v55  ;;  %v2997_v4 = vcombine.high %v1624_v59, %v1631_v60 }
 0x486   :  { %v627_v9 = vcombine.low %v603_v0, %v619_v5  ;;  %v628_v10 = vcombine.high %v603_v0, %v619_v5 }
 0x487   :  { %970 = vadd.xlane.f32.xlu0 %v969_v8  ;;  %v629_v12 = vcombine.low %v610_v7, %v626_v11  ;;  %v630_v13 = vcombine.high %v610_v7, %v626_v11  ;;  %v1668_v5 = vcombine.low %v1640_v61, %v1647_v62  ;;  %v2998_v6 = vcombine.high %v1640_v61, %v1647_v62 }
 0x488   :  { %3105 = vmatpush3.msra.mxu0 %v627_v9  ;;  %3110 = vmatpush3.msra.mxu1 %v628_v10 }
 0x489   :  { %3107 = vmatmul.mubr.msk.f32.vlgmr.msra.gmra.mxu0 %vm631_vm2, %v3224_v49  ;;  %3112 = vmatmul.mubr.msk.f32.vlgmr.msra.gmra.mxu1 %vm631_vm2, %v3226_v54 }
 0x48a   :  { %3114 = vmatprep.subr.mxu0 %v3350_v35  ;;  %3119 = vmatprep.subr.mxu1 %v3350_v35 }
 0x48b   :  { %3115 = vmatpush3.msra.mxu0 %v629_v12  ;;  %3120 = vmatpush3.msra.mxu1 %v630_v13  ;;  %v1667_v12 = vrot.slane %v2997_v4, %v3442_v46  ;;  %v1675_v13 = vrot.slane %v1668_v5, %v3442_v46 }
 0x48c   :  { %3116 = vmatprep.mubr.msk.f32.mxu0 %vm3352_vm1, %v3350_v35  ;;  %3121 = vmatprep.mubr.msk.f32.mxu1 %vm3352_vm1, %v3350_v35 }
 0x48d   :  { %3117 = vmatmul.mubr.msk.f32.vlgmr.msra.gmra.mxu0 %vm631_vm2, %v3228_v63  ;;  %3122 = vmatmul.mubr.msk.f32.vlgmr.msra.gmra.mxu1 %vm631_vm2, %v3230_v3  ;;  %v1652_v3 = vcombine.low %v1624_v59, %v1631_v60 }
 0x48e   :  { %3124 = vmatprep.subr.mxu0 %v3350_v35  ;;  %3129 = vmatprep.subr.mxu1 %v3350_v35 }
 0x48f   :  { %3126 = vmatprep.mubr.msk.f32.mxu0 %vm3352_vm1, %v3350_v35  ;;  %3131 = vmatprep.mubr.msk.f32.mxu1 %vm3352_vm1, %v3350_v35  ;;  %v1659_v11 = vrot.slane %v1652_v3, %v3442_v46 }
 0x490   :  { %3125 = vmatpush3.msra.mxu0 %v3566_v17  ;;  %3130 = vmatpush3.msra.mxu1 %v3568_v33 }
 0x491   :  { %3134 = vmatprep.subr.mxu0 %v3350_v35  ;;  %3139 = vmatprep.subr.mxu1 %v3350_v35 }
 0x493   :  { %1722 = vrot.lane.b32.xlu1 %v3552_v14, %s3349_s12 }
 0x497   :  { %1724 = vrot.lane.b32.xlu1 %v3556_v15, %s3349_s12 }
 0x49b   :  { %1726 = vrot.lane.b32.xlu1 %v3560_v16, %s3349_s12 }
 0x49d   :  { %1720 = vrot.lane.b32.xlu0 %v3413_v30, %s3349_s12 }
 0x507   :  { %v962_v19 = vpop.xlane.xlu0 %961 }
 0x508   :  { %3231 = vrcp.f32 %v962_v19 }
 0x50b   :  { %v965_v18 = vpop.xlane.xlu1 %964 }
 0x50c   :  { %v968_v20 = vpop.xlane.xlu0 %967  ;;  %3233 = vrcp.f32 %v965_v18  ;;  %v1683_v18 = vrot.slane %v2998_v6, %v3442_v46 }
 0x50d   :  { %3235 = vrcp.f32 %v968_v20 }
 0x50f   :  { %v1723_v36 = vpop.permute.xlu1 %1722 }
 0x510   :  { %v971_v22 = vpop.xlane.xlu0 %970 }
 0x511   :  { %3237 = vrcp.f32 %v971_v22 }
 0x513   :  { %v1725_v21 = vpop.permute.xlu1 %1724 }
 0x514   :  { %v1721_v24 = vpop.permute.xlu0 %1720 }
 0x515   :  { %v1732_v28 = vcombine.low %v1721_v24, %v1725_v21  ;;  %v1733_v29 = vcombine.high %v1721_v24, %v1725_v21  ;;  %v3232_v19 = vpop.eup %3231 }
 0x517   :  { %v1727_v23 = vpop.permute.xlu1 %1726  ;;  %v1740_v41 = vrot.slane %v1732_v28, %v3442_v46  ;;  %v1747_v42 = vrot.slane %v1733_v29, %v3442_v46  ;;  %v1684_v28 = vcombine.low %v1659_v11, %v1667_v12  ;;  %v1700_v29 = vcombine.low %v1675_v13, %v1683_v18 }
 0x518   :  { %v1748_v25 = vcombine.low %v1723_v36, %v1727_v23  ;;  %v1749_v34 = vcombine.high %v1723_v36, %v1727_v23 }
 0x519   :  { %v3234_v22 = vpop.eup %3233  ;;  %v1692_v50 = vrot.slane %v1684_v28, %v3450_v55  ;;  %v1708_v51 = vrot.slane %v1700_v29, %v3450_v55 }
 0x51a   :  { %v1756_v37 = vrot.slane %v1748_v25, %v3442_v46  ;;  %v1763_v38 = vrot.slane %v1749_v34, %v3442_v46  ;;  %v3606_v25 = vld [vmem:[#allocation7 + $0x18] sm:$0xff]  ;;  %v3236_v31 = vpop.eup %3235 }
 0x51b   :  { %v1716_v59 = vcombine.low %v1692_v50, %v1708_v51  ;;  %v1717_v60 = vcombine.high %v1692_v50, %v1708_v51 }
 0x51c   :  { %v1764_v45 = vcombine.low %v1740_v41, %v1756_v37  ;;  %v1765_v47 = vcombine.high %v1740_v41, %v1756_v37  ;;  %v1780_v48 = vcombine.low %v1747_v42, %v1763_v38  ;;  %v1781_v49 = vcombine.high %v1747_v42, %v1763_v38 }
 0x51e   :  { %v1772_v54 = vrot.slane %v1764_v45, %v3450_v55  ;;  %v1779_v56 = vrot.slane %v1765_v47, %v3450_v55  ;;  %v1788_v57 = vrot.slane %v1780_v48, %v3450_v55  ;;  %v1795_v58 = vrot.slane %v1781_v49, %v3450_v55  ;;  %v3238_v42 = vpop.eup %3237 }
 0x51f   :  { %v1685_v45 = vcombine.high %v1659_v11, %v1667_v12  ;;  %v1701_v47 = vcombine.high %v1675_v13, %v1683_v18 }
 0x520   :  { %v1800_v63 = vcombine.low %v1772_v54, %v1779_v56  ;;  %v2999_v0 = vcombine.high %v1772_v54, %v1779_v56  ;;  %v1816_v1 = vcombine.low %v1788_v57, %v1795_v58  ;;  %v3000_v2 = vcombine.high %v1788_v57, %v1795_v58 }
 0x521   :  { %v1699_v58 = vrot.slane %v1685_v45, %v3450_v55  ;;  %v1715_v61 = vrot.slane %v1701_v47, %v3450_v55 }
 0x522   :  { %v1807_v7 = vrot.slane %v1800_v63, %v3442_v46  ;;  %v1815_v8 = vrot.slane %v2999_v0, %v3442_v46  ;;  %v1823_v9 = vrot.slane %v1816_v1, %v3442_v46  ;;  %v1831_v10 = vrot.slane %v3000_v2, %v3442_v46 }
 0x523   :  { %v1718_v0 = vcombine.low %v1699_v58, %v1715_v61  ;;  %v1719_v1 = vcombine.high %v1699_v58, %v1715_v61 }
 0x524   :  { %v1832_v36 = vcombine.low %v1807_v7, %v1815_v8  ;;  %v1848_v20 = vcombine.low %v1823_v9, %v1831_v10  ;;  %v1833_v32 = vcombine.high %v1807_v7, %v1815_v8  ;;  %v1849_v37 = vcombine.high %v1823_v9, %v1831_v10  ;;  %v3657_v10 = vld [vmem:[%s3735_s4] ss:$0 sm:$0xff]  ;;  %s3355_s4 = smov [#allocation8]  }
 0x525   :  { %s2958_s15 = sshll.u32 %s3355_s4, 4  ;;  %s2959_s15 = int_to_ptr.vmem [resolvable:$true] %s2958_s15 }
 0x526   :  { %v1840_v39 = vrot.slane %v1832_v36, %v3450_v55  ;;  %v1856_v40 = vrot.slane %v1848_v20, %v3450_v55  ;;  %v1847_v56 = vrot.slane %v1833_v32, %v3450_v55  ;;  %v1863_v57 = vrot.slane %v1849_v37, %v3450_v55  ;;  %s3315_s16 = scalar_lea.vmem %s2959_s15, 256  ;;  %p3320_p2 = scmp.lt.s32.totalorder %s2959_s15, %s2959_s15 }
 0x527   :  { %p3316_p1 = scmp.ne.s32.totalorder %s2959_s15, %s3315_s16  ;;  %p3321_p3 = scmp.lt.s32.totalorder %s3315_s16, %s3315_s16 }
 0x528   :  { %v1864_v53 = vcombine.low %v1840_v39, %v1856_v40  ;;  %v1865_v54 = vcombine.high %v1840_v39, %v1856_v40  ;;  %v1866_v62 = vcombine.low %v1847_v56, %v1863_v57  ;;  %v1867_v63 = vcombine.high %v1847_v56, %v1863_v57 }
 0x529   :  { %p3322_p4 = por %p3321_p3, %p3320_p2 }
 0x52b   :  { %p3323_p5 = pnand %p3322_p4, %p3316_p1 }
 0x549   :  { %v1041_v21 = vpop.f32.mrf.mxu0  ;;  %v1114_v24 = vpop.f32.mrf.mxu1 }
 0x54a   :  { %v1268_v23 = vmul.f32 %v3232_v19, %v1041_v21  ;;  %v1269_v34 = vmul.f32 %v3234_v22, %v1114_v24 }
 0x54b   :  { %v3108_v26 = vpop.f32.mrf.mxu0  ;;  %v3113_v38 = vpop.f32.mrf.mxu1 }
 0x54c   :  { %3132 = vmatmul.mubr.msk.f32.vlgmr.msra.gmra.mxu1 %vm631_vm2, %v1268_v23  ;;  %3127 = vmatmul.mubr.msk.f32.vlgmr.msra.gmra.mxu0 %vm631_vm2, %v1269_v34 }
 0x54d   :  { %v1187_v41 = vpop.f32.mrf.mxu0  ;;  %3140 = vmatpush3.msra.mxu1 %v3606_v25  ;;  %v1260_v44 = vpop.f32.mrf.mxu1  ;;  %3135 = vmatpush3.msra.mxu0 %v3608_v27 }
 0x54e   :  { %v1270_v43 = vmul.f32 %v3236_v31, %v1187_v41  ;;  %3136 = vmatprep.mubr.msk.f32.mxu0 %vm3352_vm1, %v3350_v35  ;;  %v1271_v48 = vmul.f32 %v3238_v42, %v1260_v44  ;;  %3141 = vmatprep.mubr.msk.f32.mxu1 %vm3352_vm1, %v3350_v35 }
 0x54f   :  { %v3118_v49 = vpop.f32.mrf.mxu0  ;;  %3144 = vmatprep.subr.mxu0 %v3350_v35  ;;  %v3123_v52 = vpop.f32.mrf.mxu1  ;;  %3149 = vmatprep.subr.mxu1 %v3350_v35 }
 0x550   :  { %3137 = vmatmul.mubr.msk.f32.vlgmr.msra.gmra.mxu0 %vm631_vm2, %v1270_v43  ;;  %3142 = vmatmul.mubr.msk.f32.vlgmr.msra.gmra.mxu1 %vm631_vm2, %v1271_v48 }
 0x551   :  { %3145 = vmatpush3.xpose.msk.msra.mxu0 %vm631_vm2, %v1864_v53  ;;  %3150 = vmatpush3.xpose.msk.msra.mxu1 %vm631_vm2, %v1865_v54 }
 0x552   :  { %3146 = vmatprep.mubr.msk.f32.mxu0 %vm3352_vm1, %v3350_v35  ;;  %3151 = vmatprep.mubr.msk.f32.mxu1 %vm3352_vm1, %v3350_v35 }
 0x553   :  { %3154 = vmatprep.subr.mxu0 %v3350_v35  ;;  %3159 = vmatprep.subr.mxu1 %v3350_v35 }
 0x554   :  { %3147 = vmatmul.mubr.msk.f32.vlgmr.msra.gmra.mxu0 %vm631_vm2, %v1716_v59  ;;  %3152 = vmatmul.mubr.msk.f32.vlgmr.msra.gmra.mxu1 %vm631_vm2, %v1717_v60 }
 0x555   :  { %3155 = vmatpush3.xpose.msk.msra.mxu0 %vm631_vm2, %v1866_v62  ;;  %3160 = vmatpush3.xpose.msk.msra.mxu1 %vm631_vm2, %v1867_v63 }
 0x556   :  { %3156 = vmatprep.mubr.msk.f32.mxu0 %vm3352_vm1, %v3350_v35  ;;  %3161 = vmatprep.mubr.msk.f32.mxu1 %vm3352_vm1, %v3350_v35 }
 0x557   :  { %3164 = vmatprep.subr.mxu0 %v3350_v35  ;;  %3169 = vmatprep.subr.mxu1 %v3350_v35 }
 0x558   :  { %3157 = vmatmul.mubr.msk.f32.vlgmr.msra.gmra.mxu0 %vm631_vm2, %v1718_v0  ;;  %3162 = vmatmul.mubr.msk.f32.vlgmr.msra.gmra.mxu1 %vm631_vm2, %v1719_v1 }
 0x559   :  { %3166 = vmatprep.mubr.msk.f32.mxu0 %vm3352_vm1, %v3350_v35  ;;  %3171 = vmatprep.mubr.msk.f32.mxu1 %vm3352_vm1, %v3350_v35 }
 0x60c   :  { %v1414_v2 = vpop.f32.mrf.mxu1  ;;  %v1341_v3 = vpop.f32.mrf.mxu0 }
 0x60d   :  { %v1415_v6 = vadd.f32 %v1414_v2, %v1341_v3 }
 0x60e   :  { %v3133_v4 = vpop.f32.mrf.mxu1  ;;  %v3128_v5 = vpop.f32.mrf.mxu0 }
 0x610   :  { %v1487_v7 = vpop.f32.mrf.mxu0  ;;  %v1561_v8 = vpop.f32.mrf.mxu1 }
 0x611   :  { %v1491_v9 = vadd.f32 %v1487_v7, %v1415_v6 }
 0x612   :  { %v3138_v11 = vpop.f32.mrf.mxu0  ;;  %v3143_v12 = vpop.f32.mrf.mxu1 }
 0x613   :  { %v1565_v13 = vadd.f32 %v1561_v8, %v1491_v9 }
 0x614   :  { %v2088_v18 = vpop.f32.mrf.mxu0  ;;  %v2164_v19 = vpop.f32.mrf.mxu1 }
 0x615   :  { %v1572_v36 = vadd.f32 %v3657_v10, %v1565_v13  ;;  %v2320_v20 = vsel %vm631_vm2, %v2088_v18, -inf  ;;  %v2323_v21 = vsel %vm631_vm2, %v2164_v19, -inf }
 0x616   :  { %2321 = vmax.xlane.f32.xlu0 %v2320_v20  ;;  %v3148_v22 = vpop.f32.mrf.mxu0  ;;  %2324 = vmax.xlane.f32.xlu1 %v2323_v21  ;;  %v3153_v23 = vpop.f32.mrf.mxu1 }
 0x617   :  { %1573 = vst.msk [vmem:[#allocation8] sm:$0xff] %vm64_vm0, %v1572_v36 }
 0x618   :  { %v2240_v24 = vpop.f32.mrf.mxu0  ;;  %v2316_v34 = vpop.f32.mrf.mxu1 }
 0x619   :  { %v2326_v26 = vsel %vm631_vm2, %v2240_v24, -inf  ;;  %v2329_v31 = vsel %vm631_vm2, %v2316_v34, -inf }
 0x61a   :  { %2327 = vmax.xlane.f32.xlu0 %v2326_v26  ;;  %v3158_v28 = vpop.f32.mrf.mxu0  ;;  %v3163_v29 = vpop.f32.mrf.mxu1 }
 0x61e   :  { %2330 = vmax.xlane.f32.xlu0 %v2329_v31 }
 0x627   :  { %1870 = vrot.lane.b32.xlu1 %v3552_v14, %s3351_s2 }
 0x62b   :  { %1872 = vrot.lane.b32.xlu1 %v3556_v15, %s3351_s2 }
 0x62f   :  { %1874 = vrot.lane.b32.xlu1 %v3560_v16, %s3351_s2 }
 0x634   :  { %1868 = vrot.lane.b32.xlu0 %v3413_v30, %s3351_s2 }
 0x69f   :  { %v2322_v32 = vpop.xlane.xlu0 %2321  ;;  %v2325_v37 = vpop.xlane.xlu1 %2324 }
 0x6a0   :  { %v2332_v38 = vsub.f32 %v2088_v18, %v2322_v32  ;;  %v2333_v39 = vsub.f32 %v2164_v19, %v2325_v37 }
 0x6a2   :  { %v2336_v40 = vmul.f32 1.442695, %v2332_v38  ;;  %v2338_v41 = vmul.f32 1.442695, %v2333_v39 }
 0x6a3   :  { %v2328_v42 = vpop.xlane.xlu0 %2327  ;;  %v1871_v43 = vpop.permute.xlu1 %1870 }
 0x6a4   :  { %3239 = vpow2.f32 %v2336_v40  ;;  %v2334_v44 = vsub.f32 %v2240_v24, %v2328_v42 }
 0x6a5   :  { %3241 = vpow2.f32 %v2338_v41 }
 0x6a6   :  { %v2340_v14 = vmul.f32 1.442695, %v2334_v44 }
 0x6a7   :  { %v1873_v45 = vpop.permute.xlu1 %1872  ;;  %v2331_v15 = vpop.xlane.xlu0 %2330 }
 0x6a8   :  { %3243 = vpow2.f32 %v2340_v14  ;;  %v2335_v47 = vsub.f32 %v2316_v34, %v2331_v15 }
 0x6aa   :  { %v2342_v16 = vmul.f32 1.442695, %v2335_v47 }
 0x6ab   :  { %v1875_v48 = vpop.permute.xlu1 %1874  ;;  %v1869_v49 = vpop.permute.xlu0 %1868 }
 0x6ac   :  { %3245 = vpow2.f32 %v2342_v16  ;;  %v1896_v30 = vcombine.low %v1871_v43, %v1875_v48  ;;  %v1897_v50 = vcombine.high %v1871_v43, %v1875_v48  ;;  %v1880_v51 = vcombine.low %v1869_v49, %v1873_v45 }
 0x6ad   :  { %v1881_v52 = vcombine.high %v1869_v49, %v1873_v45 }
 0x6ae   :  { %v1904_v53 = vrot.slane %v1896_v30, %v3442_v46  ;;  %v1911_v54 = vrot.slane %v1897_v50, %v3442_v46  ;;  %v1888_v56 = vrot.slane %v1880_v51, %v3442_v46 }
 0x6af   :  { %v1895_v57 = vrot.slane %v1881_v52, %v3442_v46 }
 0x6b0   :  { %v1912_v58 = vcombine.low %v1888_v56, %v1904_v53  ;;  %v1913_v59 = vcombine.high %v1888_v56, %v1904_v53 }
 0x6b1   :  { %v3240_v60 = vpop.eup %3239  ;;  %v1928_v61 = vcombine.low %v1895_v57, %v1911_v54  ;;  %v1929_v62 = vcombine.high %v1895_v57, %v1911_v54 }
 0x6b2   :  { %v3242_v63 = vpop.eup %3241  ;;  %v1920_v0 = vrot.slane %v1912_v58, %v3450_v55  ;;  %v1927_v1 = vrot.slane %v1913_v59, %v3450_v55  ;;  %v2344_v2 = vsel %vm631_vm2, %v3240_v60, 0.0 }
 0x6b3   :  { %v1936_v3 = vrot.slane %v1928_v61, %v3450_v55  ;;  %v1943_v4 = vrot.slane %v1929_v62, %v3450_v55  ;;  %2345 = vadd.xlane.f32.xlu1 %v2344_v2  ;;  %v2347_v5 = vsel %vm631_vm2, %v3242_v63, 0.0 }
 0x6b4   :  { %v1948_v6 = vcombine.low %v1920_v0, %v1927_v1  ;;  %v3001_v7 = vcombine.high %v1920_v0, %v1927_v1  ;;  %2348 = vadd.xlane.f32.xlu0 %v2347_v5 }
 0x6b5   :  { %v3244_v8 = vpop.eup %3243  ;;  %v1964_v9 = vcombine.low %v1936_v3, %v1943_v4  ;;  %v3002_v11 = vcombine.high %v1936_v3, %v1943_v4 }
 0x6b6   :  { %v1955_v12 = vrot.slane %v1948_v6, %v3442_v46  ;;  %v1963_v13 = vrot.slane %v3001_v7, %v3442_v46  ;;  %v2350_v18 = vsel %vm631_vm2, %v3244_v8, 0.0 }
 0x6b7   :  { %v1971_v19 = vrot.slane %v1964_v9, %v3442_v46  ;;  %v1979_v36 = vrot.slane %v3002_v11, %v3442_v46 }
 0x6b8   :  { %2351 = vadd.xlane.f32.xlu0 %v2350_v18  ;;  %v1980_v20 = vcombine.low %v1955_v12, %v1963_v13  ;;  %v1981_v21 = vcombine.high %v1955_v12, %v1963_v13 }
 0x6b9   :  { %v3246_v22 = vpop.eup %3245  ;;  %v1996_v23 = vcombine.low %v1971_v19, %v1979_v36  ;;  %v1997_v24 = vcombine.high %v1971_v19, %v1979_v36 }
 0x6ba   :  { %v2353_v34 = vsel %vm631_vm2, %v3246_v22, 0.0  ;;  %v1988_v26 = vrot.slane %v1980_v20, %v3450_v55  ;;  %v1995_v29 = vrot.slane %v1981_v21, %v3450_v55 }
 0x6bb   :  { %v2004_v28 = vrot.slane %v1996_v23, %v3450_v55  ;;  %v2011_v31 = vrot.slane %v1997_v24, %v3450_v55 }
 0x6bc   :  { %2354 = vadd.xlane.f32.xlu0 %v2353_v34 }
 0x6bd   :  { %v2012_v32 = vcombine.low %v1988_v26, %v2004_v28  ;;  %v2013_v37 = vcombine.high %v1988_v26, %v2004_v28  ;;  %v2014_v46 = vcombine.low %v1995_v29, %v2011_v31  ;;  %v2015_v38 = vcombine.high %v1995_v29, %v2011_v31 }
 0x6bf   :  { %3165 = vmatpush3.msra.mxu0 %v2012_v32  ;;  %3170 = vmatpush3.msra.mxu1 %v2013_v37 }
 0x6c0   :  { %3167 = vmatmul.mubr.msk.f32.vlgmr.msra.gmra.mxu0 %vm631_vm2, %v3240_v60  ;;  %3172 = vmatmul.mubr.msk.f32.vlgmr.msra.gmra.mxu1 %vm631_vm2, %v3242_v63 }
 0x6c1   :  { %3174 = vmatprep.subr.mxu0 %v3350_v35  ;;  %3179 = vmatprep.subr.mxu1 %v3350_v35 }
 0x6c2   :  { %3175 = vmatpush3.msra.mxu0 %v2014_v46  ;;  %3180 = vmatpush3.msra.mxu1 %v2015_v38 }
 0x6c3   :  { %3176 = vmatprep.mubr.msk.f32.mxu0 %vm3352_vm1, %v3350_v35  ;;  %3181 = vmatprep.mubr.msk.f32.mxu1 %vm3352_vm1, %v3350_v35 }
 0x6c4   :  { %3177 = vmatmul.mubr.msk.f32.vlgmr.msra.gmra.mxu0 %vm631_vm2, %v3244_v8  ;;  %3182 = vmatmul.mubr.msk.f32.vlgmr.msra.gmra.mxu1 %vm631_vm2, %v3246_v22 }
 0x6c5   :  { %3184 = vmatprep.subr.mxu0 %v3350_v35  ;;  %3189 = vmatprep.subr.mxu1 %v3350_v35 }
 0x6c6   :  { %3185 = vmatpush3.msra.mxu0 %v3566_v17  ;;  %3186 = vmatprep.mubr.msk.f32.mxu0 %vm3352_vm1, %v3350_v35 }
 0x6c7   :  { %3190 = vmatpush3.msra.mxu1 %v3568_v33  ;;  %3191 = vmatprep.mubr.msk.f32.mxu1 %vm3352_vm1, %v3350_v35 }
 0x6c8   :  { %3194 = vmatprep.subr.mxu0 %v3350_v35  ;;  %3199 = vmatprep.subr.mxu1 %v3350_v35 }
 0x73c   :  { %v2346_v40 = vpop.xlane.xlu1 %2345 }
 0x73d   :  { %v2349_v55 = vpop.xlane.xlu0 %2348  ;;  %3247 = vrcp.f32 %v2346_v40 }
 0x73e   :  { %3249 = vrcp.f32 %v2349_v55 }
 0x741   :  { %v2352_v39 = vpop.xlane.xlu0 %2351 }
 0x742   :  { %3251 = vrcp.f32 %v2352_v39 }
 0x745   :  { %v2355_v41 = vpop.xlane.xlu0 %2354 }
 0x746   :  { %3253 = vrcp.f32 %v2355_v41 }
 0x74a   :  { %v3248_v17 = vpop.eup %3247 }
 0x74b   :  { %v3250_v42 = vpop.eup %3249 }
 0x74f   :  { %v3252_v47 = vpop.eup %3251 }
 0x753   :  { %v3254_v16 = vpop.eup %3253 }
 0x780   :  { %v2425_v43 = vpop.f32.mrf.mxu0  ;;  %v2498_v44 = vpop.f32.mrf.mxu1 }
 0x781   :  { %v2652_v33 = vmul.f32 %v3248_v17, %v2425_v43  ;;  %v2653_v14 = vmul.f32 %v3250_v42, %v2498_v44 }
 0x782   :  { %v3168_v45 = vpop.f32.mrf.mxu0  ;;  %v3173_v15 = vpop.f32.mrf.mxu1 }
 0x783   :  { %3187 = vmatmul.mubr.msk.f32.vlgmr.msra.gmra.mxu0 %vm631_vm2, %v2653_v14  ;;  %3192 = vmatmul.mubr.msk.f32.vlgmr.msra.gmra.mxu1 %vm631_vm2, %v2652_v33 }
 0x784   :  { %v2571_v48 = vpop.f32.mrf.mxu0  ;;  %v2644_v49 = vpop.f32.mrf.mxu1  ;;  %3195 = vmatpush3.msra.mxu0 %v3608_v27  ;;  %3196 = vmatprep.mubr.msk.f32.mxu0 %vm3352_vm1, %v3350_v35 }
 0x785   :  { %v2654_v30 = vmul.f32 %v3252_v47, %v2571_v48  ;;  %v2655_v50 = vmul.f32 %v3254_v16, %v2644_v49  ;;  %3200 = vmatpush3.msra.mxu1 %v3606_v25  ;;  %3201 = vmatprep.mubr.msk.f32.mxu1 %vm3352_vm1, %v3350_v35 }
 0x786   :  { %v3178_v51 = vpop.f32.mrf.mxu0  ;;  %v3183_v52 = vpop.f32.mrf.mxu1 }
 0x787   :  { %3197 = vmatmul.mubr.msk.f32.vlgmr.msra.gmra.mxu0 %vm631_vm2, %v2654_v30  ;;  %3202 = vmatmul.mubr.msk.f32.vlgmr.msra.gmra.mxu1 %vm631_vm2, %v2655_v50 }
 0x843   :  { %v2725_v53 = vpop.f32.mrf.mxu0  ;;  %v2798_v54 = vpop.f32.mrf.mxu1 }
 0x844   :  { %v2799_v57 = vadd.f32 %v2798_v54, %v2725_v53 }
 0x845   :  { %v3188_v56 = vpop.f32.mrf.mxu0  ;;  %v3193_v27 = vpop.f32.mrf.mxu1 }
 0x847   :  { %v2871_v58 = vpop.f32.mrf.mxu0  ;;  %v2945_v59 = vpop.f32.mrf.mxu1 }
 0x848   :  { %v2875_v60 = vadd.f32 %v2871_v58, %v2799_v57 }
 0x849   :  { %v3198_v61 = vpop.f32.mrf.mxu0  ;;  %v3203_v62 = vpop.f32.mrf.mxu1 }
 0x84a   :  { %v2949_v25 = vadd.f32 %v2945_v59, %v2875_v60 }
 0x84c   :  { %v2950_v35 = vadd.f32 %v3657_v10, %v2949_v25 }
 0x84e   :  { %2952 = vst.msk [vmem:[#allocation8 + $0x8] sm:$0xff] %vm64_vm0, %v2950_v35 }
 0x84f   :  { %3326 = shalt.err (!%p3323_p5)
}
 0x850   :  { %2964 = dma.vmem_to_hbm [thread:$0]  %s2959_s15, 256, %s3736_s5, [#allocation4], %s3343_s23, %s3343_s23, %s3344_s24  }
 0x851   :  { %3339 = dma.done.wait [#allocation4], 256  }
 0x852   :  { %3340 = vsyncadd [#allocation4], 4294967040 }
 0x853   :  { %2968 = vsyncpa [#allocation3], 1 }
 0x854   :  { %2969 = vsyncpa [#allocation6], 1 }
 0x855   :  { %2970 = vsyncpa [#allocation4], 1 }

</bundles_post_ra>
